<compile_context>
chip_gen: v6e
topology: v6e:2x2x1
jax: 0.10.0
libtpu: 0.0.40
codegen_flags: <defaults>
</compile_context>

<pallas_src>
import jax
import jax.numpy as jnp
from jax.experimental import pallas as pl
from jax.experimental.pallas import tpu as pltpu


# ----------------------------- Pallas kernel ------------------------------ #

def _lin(h, w_ref, b_ref):
    # one nn.Linear: h @ W + b, fp32 accumulation on the MXU.
    w = w_ref[...]
    if w.dtype != h.dtype:
        # Only taken when weights are stored bf16 host-side (v6e/v7x packing);
        # biases and the accumulator stay f32.
        h = h.astype(w.dtype)
    return jnp.dot(h, w, preferred_element_type=jnp.float32) + b_ref[...]


def iwae2_forward_kernel(x_ref, eps1_ref,
                         qW1, qb1, qW2, qb2, qWmv, qbmv,   # q_fc_1 + fused h1 head
                         dW1, db1, dW2, db2, dW3, db3,     # p_fc_2 (last layer lane-padded)
                         xhat_ref):
    x = x_ref[...]

    # --- encoder level 1: q_fc_1 -> fused (mean|logvar) head -> h1 ---
    h = jnp.tanh(_lin(x, qW1, qb1))
    h = jnp.tanh(_lin(h, qW2, qb2))
    mv = _lin(h, qWmv, qbmv)                 # (bm, 2*S1p): [mean | logvar], halves 128-aligned
    s1p = mv.shape[1] // 2
    mean1 = mv[:, :s1p]                      # lane-tile aligned static slices
    logvar1 = mv[:, s1p:]
    # NOTE: the PyTorch reference scales the noise by var = exp(logvar), not the
    # std exp(0.5*logvar); exp(logvar) can overflow f32 for very large logvar.
    h1 = eps1_ref[...] * jnp.exp(logvar1) + mean1   # padded lanes are exact zeros

    # --- decoder likelihood path: X_hat = p_fc_2(h1) ---
    d = jnp.tanh(_lin(h1, dW1, db1))         # dW1 has zero rows for the padded lanes
    d = jnp.tanh(_lin(d, dW2, db2))
    xhat_ref[...] = jax.nn.sigmoid(_lin(d, dW3, db3))   # lane-dense (bm, 128k) store


# ------------------------------- wrapper ----------------------------------- #

def _round_up(n, m):
    return -(-n // m) * m


def _device_kind():
    try:
        return jax.devices()[0].device_kind.lower()
    except Exception:
        return ""


def _choose_block_b(B, *, sublane, two_tc, cap=2048):
    """Largest batch tile that divides B, is sublane-aligned, and fits the cap.

    The activation footprint per tile is block_b * (F + S1p + 2*det1 + 2*S1p +
    out_pad) * 4 B * 2 buffers — a few MiB at cap=2048 for these layer widths,
    so the cap is a conservative VMEM bound (raise vmem_limit_bytes if widened).
    On v7x the cap is additionally B//2 so the parallel grid has >=2 steps and
    both TensorCores get work.
    """
    if two_tc and B >= 2 * sublane:
        cap = min(cap, B // 2)
    cap = min(cap, B)
    candidates = [b for b in range(sublane, cap + 1, sublane) if B % b == 0]
    return max(candidates) if candidates else B


def _build_call(B, block_b, F, S1p, out_pad, kernel_params,
                single_buffer_weights, vmem_limit_bytes):
    act_specs = [
        pl.BlockSpec((block_b, F), lambda i: (i, 0)),
        pl.BlockSpec((block_b, S1p), lambda i: (i, 0)),
    ]
    if single_buffer_weights:
        # Constant index_map => the tile never changes; single-buffer to halve
        # the weight VMEM footprint (matters on v7x's 64 MiB VMEM).
        wgt_specs = [pl.BlockSpec(p.shape, lambda i: (0, 0),
                                  pipeline_mode=pl.Buffered(1))
                     for p in kernel_params]
    else:
        wgt_specs = [pl.BlockSpec(p.shape, lambda i: (0, 0)) for p in kernel_params]

    cp_kwargs = dict(dimension_semantics=("parallel",))
    if vmem_limit_bytes is not None:
        cp_kwargs["vmem_limit_bytes"] = vmem_limit_bytes

    return pl.pallas_call(
        iwae2_forward_kernel,
        out_shape=jax.ShapeDtypeStruct((B, out_pad), jnp.float32),
        grid_spec=pltpu.PrefetchScalarGridSpec(
            num_scalar_prefetch=0,
            grid=(B // block_b,),
            in_specs=act_specs + wgt_specs,
            out_specs=pl.BlockSpec((block_b, out_pad), lambda i: (i, 0)),
        ),
        compiler_params=pltpu.CompilerParams(**cp_kwargs),
    )


def importance_vae_2_forward(x, eps1, kernel_params, *, block_b=None,
                             vmem_limit_bytes=None):
    """Returns X_hat, exactly like importance_vae_2.forward(x, K, device)."""
    B, F = x.shape
    S1p = kernel_params[4].shape[1] // 2      # fused head width / 2 (lane-padded S1)
    out_pad = kernel_params[-1].shape[1]      # lane-padded output width (>=128)

    weights_bf16 = kernel_params[0].dtype == jnp.bfloat16
    sublane = 16 if weights_bf16 else 8       # bf16 packs 16 sublanes / vreg
    kind = _device_kind()
    two_tc = ("v7" in kind) or ("7x" in kind)

    if block_b is None:
        block_b = _choose_block_b(B, sublane=sublane, two_tc=two_tc)
    assert B % block_b == 0 and (block_b == B or block_b % sublane == 0), \
        f"block_b={block_b} must divide B={B} and be a multiple of {sublane}"

    # Pad the host-side noise to the lane-aligned width; padded lanes end up as
    # exact zeros in h1 and hit zero rows of dW1, so results are unchanged.
    eps1_p = eps1 if eps1.shape[1] == S1p else jnp.pad(
        eps1, ((0, 0), (0, S1p - eps1.shape[1])))

    single_buf = two_tc
    try:
        fn = _build_call(B, block_b, F, S1p, out_pad, kernel_params,
                         single_buf, vmem_limit_bytes)
        xhat_pad = fn(x, eps1_p, *kernel_params)
    except Exception:
        if not single_buf:
            raise
        # Fall back to default (double-buffered) weight specs if Buffered(1)
        # is rejected by the installed Pallas version.
        fn = _build_call(B, block_b, F, S1p, out_pad, kernel_params,
                         False, vmem_limit_bytes)
        xhat_pad = fn(x, eps1_p, *kernel_params)
    return xhat_pad[:, :F]                    # drop the zero-padded lanes


# --------------------------- parameter creation ----------------------------- #

def _init_linear(key, fan_in, fan_out):
    # deterministic PyTorch-style init: U(-1/sqrt(fan_in), 1/sqrt(fan_in))
    kw, kb = jax.random.split(key)
    bound = 1.0 / float(fan_in) ** 0.5
    w = jax.random.uniform(kw, (fan_in, fan_out), jnp.float32, -bound, bound)
    b = jax.random.uniform(kb, (1, fan_out), jnp.float32, -bound, bound)
    return w, b


def make_module_params(key, feature_size, det_dim_1, det_dim_2,
                       stoc_dim_1, stoc_dim_2):
    """All nn.Linear weights of importance_vae_2, stored as (in, out) / (1, out)."""
    names_dims = [
        ("q_fc_1.0", feature_size, det_dim_1), ("q_fc_1.2", det_dim_1, det_dim_1),
        ("q_fc_mean_h1", det_dim_1, stoc_dim_1), ("q_fc_logvar_h1", det_dim_1, stoc_dim_1),
        ("q_fc_2.0", stoc_dim_1, det_dim_2), ("q_fc_2.2", det_dim_2, det_dim_2),
        ("q_fc_mean_h2", det_dim_2, stoc_dim_2), ("q_fc_logvar_h2", det_dim_2, stoc_dim_2),
        ("p_fc_1.0", stoc_dim_2, det_dim_2), ("p_fc_1.2", det_dim_2, det_dim_2),
        ("p_fc_mean", det_dim_2, stoc_dim_1), ("p_fc_logvar", det_dim_2, stoc_dim_1),
        ("p_fc_2.0", stoc_dim_1, det_dim_1), ("p_fc_2.2", det_dim_1, det_dim_1),
        ("p_fc_2.4", det_dim_1, feature_size),
    ]
    keys = jax.random.split(key, len(names_dims))
    return {name: _init_linear(k, fi, fo)
            for k, (name, fi, fo) in zip(keys, names_dims)}


def pack_forward_params(module_params, weight_dtype=jnp.float32):
    """Build the fused / lane-padded parameter list consumed by the kernel.

    Only the layers forward() actually needs are kept (q_fc_1, the h1 heads and
    p_fc_2); q_fc_2 / h2 heads / p_fc_1 are dead work for X_hat and are dropped.
    Set weight_dtype=jnp.bfloat16 on v6e/v7x to halve weight DMA/VMEM; biases
    stay f32 and accumulation stays f32 inside the kernel.
    """
    qW1, qb1 = module_params["q_fc_1.0"]
    qW2, qb2 = module_params["q_fc_1.2"]
    Wm, bm = module_params["q_fc_mean_h1"]
    Wv, bv = module_params["q_fc_logvar_h1"]
    dW1, db1 = module_params["p_fc_2.0"]
    dW2, db2 = module_params["p_fc_2.2"]
    dW3, db3 = module_params["p_fc_2.4"]

    # Lane-tile aligned fused head: pad mean and logvar halves to S1p (mult of 128)
    # so the in-kernel split lands on a 128-lane boundary.
    S1 = Wm.shape[1]
    S1p = max(128, _round_up(S1, 128))
    padc = ((0, 0), (0, S1p - S1))
    qWmv = jnp.concatenate([jnp.pad(Wm, padc), jnp.pad(Wv, padc)], axis=1)
    qbmv = jnp.concatenate([jnp.pad(bm, padc), jnp.pad(bv, padc)], axis=1)
    # Matching zero rows in the decoder's first layer so padded h1 lanes are inert.
    dW1p = jnp.pad(dW1, ((0, S1p - S1), (0, 0)))

    # Lane-dense output: pad the final layer's out-features to a multiple of 128
    # so the kernel's only store is an unmasked vst; the wrapper slices back.
    F = dW3.shape[1]
    out_pad = max(128, _round_up(F, 128))
    dW3p = jnp.pad(dW3, ((0, 0), (0, out_pad - F)))
    db3p = jnp.pad(db3, ((0, 0), (0, out_pad - F)))

    weights = [qW1, qW2, qWmv, dW1p, dW2, dW3p]
    if weight_dtype != jnp.float32:
        weights = [w.astype(weight_dtype) for w in weights]
    qW1, qW2, qWmv, dW1p, dW2, dW3p = weights
    return [qW1, qb1, qW2, qb2, qWmv, qbmv, dW1p, db1, dW2, db2, dW3p, db3p]


# ---------------------------- pure-JAX reference ---------------------------- #

def ref_forward(x, eps1, module_params):
    qW1, qb1 = module_params["q_fc_1.0"]
    qW2, qb2 = module_params["q_fc_1.2"]
    Wm, bm = module_params["q_fc_mean_h1"]
    Wv, bv = module_params["q_fc_logvar_h1"]
    dW1, db1 = module_params["p_fc_2.0"]
    dW2, db2 = module_params["p_fc_2.2"]
    dW3, db3 = module_params["p_fc_2.4"]
    h = jnp.tanh(x @ qW1 + qb1)
    h = jnp.tanh(h @ qW2 + qb2)
    mean1 = h @ Wm + bm
    logvar1 = h @ Wv + bv
    h1 = eps1 * jnp.exp(logvar1) + mean1      # noise scaled by var, per reference
    d = jnp.tanh(h1 @ dW1 + db1)
    d = jnp.tanh(d @ dW2 + db2)
    return jax.nn.sigmoid(d @ dW3 + db3)


# --------------------------------- main ------------------------------------ #

if __name__ == "__main__":
    # module config (small, consistent with the nn.Linear stack in __init__)
    feature_size, batch_size = 32, 8
    stoc_dim_1, stoc_dim_2 = 16, 8
    det_dim_1, det_dim_2 = 64, 32
    K = 3  # K only affects the dead h2 path; forward()'s return X_hat ignores it.

    root = jax.random.PRNGKey(0)
    k_par, k_x, k_e1 = jax.random.split(root, 3)

    module_params = make_module_params(k_par, feature_size, det_dim_1, det_dim_2,
                                       stoc_dim_1, stoc_dim_2)
    # Default f32 weights so the 1e-5 parity check holds; pass
    # weight_dtype=jnp.bfloat16 on v6e/v7x production runs (tolerance ~2e-2).
    weight_dtype = jnp.float32
    kernel_params = pack_forward_params(module_params, weight_dtype=weight_dtype)

    # x in [0,1] like binarized data fed to a Bernoulli VAE
    x = jax.random.uniform(k_x, (batch_size, feature_size), jnp.float32)
    # torch.randn_like noise generated host-side so the pure-JAX reference check
    # can share the exact same noise (see TODO(synk) about in-kernel PRNG).
    eps1 = jax.random.normal(k_e1, (batch_size, stoc_dim_1), jnp.float32)

    x_hat = importance_vae_2_forward(x, eps1, kernel_params)
    jax.block_until_ready(x_hat)

    x_hat_ref = ref_forward(x, eps1, module_params)
    tol = 1e-5 if weight_dtype == jnp.float32 else 2e-2
    assert x_hat.shape == (batch_size, feature_size)
    assert jnp.allclose(x_hat, x_hat_ref, atol=tol, rtol=tol)

    print("KERNEL_OK")
</pallas_src>

<mosaic_0001>
module attributes {stable_mosaic.version = 11 : i64} {
  func.func @iwae2_forward_kernel(%arg0: i32, %arg1: memref<8x32xf32, #tpu.memory_space<vmem>>, %arg2: memref<8x128xf32, #tpu.memory_space<vmem>>, %arg3: memref<32x64xf32, #tpu.memory_space<vmem>>, %arg4: memref<1x64xf32, #tpu.memory_space<vmem>>, %arg5: memref<64x64xf32, #tpu.memory_space<vmem>>, %arg6: memref<1x64xf32, #tpu.memory_space<vmem>>, %arg7: memref<64x256xf32, #tpu.memory_space<vmem>>, %arg8: memref<1x256xf32, #tpu.memory_space<vmem>>, %arg9: memref<128x64xf32, #tpu.memory_space<vmem>>, %arg10: memref<1x64xf32, #tpu.memory_space<vmem>>, %arg11: memref<64x64xf32, #tpu.memory_space<vmem>>, %arg12: memref<1x64xf32, #tpu.memory_space<vmem>>, %arg13: memref<64x128xf32, #tpu.memory_space<vmem>>, %arg14: memref<1x128xf32, #tpu.memory_space<vmem>>, %arg15: memref<8x128xf32, #tpu.memory_space<vmem>>) attributes {dimension_semantics = [#tpu.dimension_semantics<parallel>], iteration_bounds = array<i64: 1>, scalar_prefetch = 0 : i64, scratch_operands = 0 : i64, tpu.core_type = #tpu.core_type<tc>, window_params = [{transform_indices = @transform_0, window_bounds = array<i64: 8, 32>}, {transform_indices = @transform_1, window_bounds = array<i64: 8, 128>}, {pipeline_mode = #tpu.pipeline_mode<synchronous>, transform_indices = @transform_2, window_bounds = array<i64: 32, 64>}, {pipeline_mode = #tpu.pipeline_mode<synchronous>, transform_indices = @transform_3, window_bounds = array<i64: 1, 64>}, {pipeline_mode = #tpu.pipeline_mode<synchronous>, transform_indices = @transform_4, window_bounds = array<i64: 64, 64>}, {pipeline_mode = #tpu.pipeline_mode<synchronous>, transform_indices = @transform_5, window_bounds = array<i64: 1, 64>}, {pipeline_mode = #tpu.pipeline_mode<synchronous>, transform_indices = @transform_6, window_bounds = array<i64: 64, 256>}, {pipeline_mode = #tpu.pipeline_mode<synchronous>, transform_indices = @transform_7, window_bounds = array<i64: 1, 256>}, {pipeline_mode = #tpu.pipeline_mode<synchronous>, transform_indices = @transform_8, window_bounds = array<i64: 128, 64>}, {pipeline_mode = #tpu.pipeline_mode<synchronous>, transform_indices = @transform_9, window_bounds = array<i64: 1, 64>}, {pipeline_mode = #tpu.pipeline_mode<synchronous>, transform_indices = @transform_10, window_bounds = array<i64: 64, 64>}, {pipeline_mode = #tpu.pipeline_mode<synchronous>, transform_indices = @transform_11, window_bounds = array<i64: 1, 64>}, {pipeline_mode = #tpu.pipeline_mode<synchronous>, transform_indices = @transform_12, window_bounds = array<i64: 64, 128>}, {pipeline_mode = #tpu.pipeline_mode<synchronous>, transform_indices = @transform_13, window_bounds = array<i64: 1, 128>}, {transform_indices = @transform_14, window_bounds = array<i64: 8, 128>}]} {
    %c0 = arith.constant 0 : index
    %c0_0 = arith.constant 0 : index
    %0 = vector.load %arg1[%c0, %c0_0] : memref<8x32xf32, #tpu.memory_space<vmem>>, vector<8x32xf32>
    %c0_1 = arith.constant 0 : index
    %c0_2 = arith.constant 0 : index
    %1 = vector.load %arg3[%c0_1, %c0_2] : memref<32x64xf32, #tpu.memory_space<vmem>>, vector<32x64xf32>
    %cst = arith.constant dense<0.000000e+00> : vector<8x64xf32>
    %2 = tpu.matmul %0, %1, %cst {dimension_numbers = #tpu.dot_dimension_numbers<[1], [0], [0], [1], [0, 0, 1, 1], [], []>} : vector<8x32xf32>, vector<32x64xf32>, vector<8x64xf32> -> vector<8x64xf32>
    %c0_3 = arith.constant 0 : index
    %c0_4 = arith.constant 0 : index
    %3 = vector.load %arg4[%c0_3, %c0_4] : memref<1x64xf32, #tpu.memory_space<vmem>>, vector<1x64xf32>
    %4 = vector.broadcast %3 : vector<1x64xf32> to vector<8x64xf32>
    %5 = arith.addf %2, %4 : vector<8x64xf32>
    %6 = math.tanh %5 : vector<8x64xf32>
    %c0_5 = arith.constant 0 : index
    %c0_6 = arith.constant 0 : index
    %7 = vector.load %arg5[%c0_5, %c0_6] : memref<64x64xf32, #tpu.memory_space<vmem>>, vector<64x64xf32>
    %cst_7 = arith.constant dense<0.000000e+00> : vector<8x64xf32>
    %8 = tpu.matmul %6, %7, %cst_7 {dimension_numbers = #tpu.dot_dimension_numbers<[1], [0], [0], [1], [0, 0, 1, 1], [], []>} : vector<8x64xf32>, vector<64x64xf32>, vector<8x64xf32> -> vector<8x64xf32>
    %c0_8 = arith.constant 0 : index
    %c0_9 = arith.constant 0 : index
    %9 = vector.load %arg6[%c0_8, %c0_9] : memref<1x64xf32, #tpu.memory_space<vmem>>, vector<1x64xf32>
    %10 = vector.broadcast %9 : vector<1x64xf32> to vector<8x64xf32>
    %11 = arith.addf %8, %10 : vector<8x64xf32>
    %12 = math.tanh %11 : vector<8x64xf32>
    %c0_10 = arith.constant 0 : index
    %c0_11 = arith.constant 0 : index
    %13 = vector.load %arg7[%c0_10, %c0_11] : memref<64x256xf32, #tpu.memory_space<vmem>>, vector<64x256xf32>
    %cst_12 = arith.constant dense<0.000000e+00> : vector<8x256xf32>
    %14 = tpu.matmul %12, %13, %cst_12 {dimension_numbers = #tpu.dot_dimension_numbers<[1], [0], [0], [1], [0, 0, 1, 1], [], []>} : vector<8x64xf32>, vector<64x256xf32>, vector<8x256xf32> -> vector<8x256xf32>
    %c0_13 = arith.constant 0 : index
    %c0_14 = arith.constant 0 : index
    %15 = vector.load %arg8[%c0_13, %c0_14] : memref<1x256xf32, #tpu.memory_space<vmem>>, vector<1x256xf32>
    %16 = vector.broadcast %15 : vector<1x256xf32> to vector<8x256xf32>
    %17 = arith.addf %14, %16 : vector<8x256xf32>
    %18 = vector.extract_strided_slice %17 {offsets = [0, 0], sizes = [8, 128], strides = [1, 1]} : vector<8x256xf32> to vector<8x128xf32>
    %19 = vector.extract_strided_slice %17 {offsets = [0, 128], sizes = [8, 128], strides = [1, 1]} : vector<8x256xf32> to vector<8x128xf32>
    %c0_15 = arith.constant 0 : index
    %c0_16 = arith.constant 0 : index
    %20 = vector.load %arg2[%c0_15, %c0_16] : memref<8x128xf32, #tpu.memory_space<vmem>>, vector<8x128xf32>
    %21 = math.exp %19 : vector<8x128xf32>
    %22 = arith.mulf %20, %21 : vector<8x128xf32>
    %23 = arith.addf %22, %18 : vector<8x128xf32>
    %c0_17 = arith.constant 0 : index
    %c0_18 = arith.constant 0 : index
    %24 = vector.load %arg9[%c0_17, %c0_18] : memref<128x64xf32, #tpu.memory_space<vmem>>, vector<128x64xf32>
    %cst_19 = arith.constant dense<0.000000e+00> : vector<8x64xf32>
    %25 = tpu.matmul %23, %24, %cst_19 {dimension_numbers = #tpu.dot_dimension_numbers<[1], [0], [0], [1], [0, 0, 1, 1], [], []>} : vector<8x128xf32>, vector<128x64xf32>, vector<8x64xf32> -> vector<8x64xf32>
    %c0_20 = arith.constant 0 : index
    %c0_21 = arith.constant 0 : index
    %26 = vector.load %arg10[%c0_20, %c0_21] : memref<1x64xf32, #tpu.memory_space<vmem>>, vector<1x64xf32>
    %27 = vector.broadcast %26 : vector<1x64xf32> to vector<8x64xf32>
    %28 = arith.addf %25, %27 : vector<8x64xf32>
    %29 = math.tanh %28 : vector<8x64xf32>
    %c0_22 = arith.constant 0 : index
    %c0_23 = arith.constant 0 : index
    %30 = vector.load %arg11[%c0_22, %c0_23] : memref<64x64xf32, #tpu.memory_space<vmem>>, vector<64x64xf32>
    %cst_24 = arith.constant dense<0.000000e+00> : vector<8x64xf32>
    %31 = tpu.matmul %29, %30, %cst_24 {dimension_numbers = #tpu.dot_dimension_numbers<[1], [0], [0], [1], [0, 0, 1, 1], [], []>} : vector<8x64xf32>, vector<64x64xf32>, vector<8x64xf32> -> vector<8x64xf32>
    %c0_25 = arith.constant 0 : index
    %c0_26 = arith.constant 0 : index
    %32 = vector.load %arg12[%c0_25, %c0_26] : memref<1x64xf32, #tpu.memory_space<vmem>>, vector<1x64xf32>
    %33 = vector.broadcast %32 : vector<1x64xf32> to vector<8x64xf32>
    %34 = arith.addf %31, %33 : vector<8x64xf32>
    %35 = math.tanh %34 : vector<8x64xf32>
    %c0_27 = arith.constant 0 : index
    %c0_28 = arith.constant 0 : index
    %36 = vector.load %arg13[%c0_27, %c0_28] : memref<64x128xf32, #tpu.memory_space<vmem>>, vector<64x128xf32>
    %cst_29 = arith.constant dense<0.000000e+00> : vector<8x128xf32>
    %37 = tpu.matmul %35, %36, %cst_29 {dimension_numbers = #tpu.dot_dimension_numbers<[1], [0], [0], [1], [0, 0, 1, 1], [], []>} : vector<8x64xf32>, vector<64x128xf32>, vector<8x128xf32> -> vector<8x128xf32>
    %c0_30 = arith.constant 0 : index
    %c0_31 = arith.constant 0 : index
    %38 = vector.load %arg14[%c0_30, %c0_31] : memref<1x128xf32, #tpu.memory_space<vmem>>, vector<1x128xf32>
    %39 = vector.broadcast %38 : vector<1x128xf32> to vector<8x128xf32>
    %40 = arith.addf %37, %39 : vector<8x128xf32>
    %41 = arith.negf %40 : vector<8x128xf32>
    %42 = math.exp %41 : vector<8x128xf32>
    %cst_32 = arith.constant 1.000000e+00 : f32
    %43 = vector.broadcast %cst_32 : f32 to vector<8x128xf32>
    %44 = arith.addf %43, %42 : vector<8x128xf32>
    %45 = arith.divf %43, %44 : vector<8x128xf32>
    %c0_33 = arith.constant 0 : index
    %c0_34 = arith.constant 0 : index
    %46 = vector.load %arg15[%c0_33, %c0_34] : memref<8x128xf32, #tpu.memory_space<vmem>>, vector<8x128xf32>
    tpu.vector_store %arg15[%c0_33, %c0_34], %45 {strides = array<i32>} : memref<8x128xf32, #tpu.memory_space<vmem>>, vector<8x128xf32>,
    return
  }
  func.func @transform_0(%arg0: i32) -> (i32, i32) {
    %c0_i32 = arith.constant 0 : i32
    %c0_i32_0 = arith.constant 0 : i32
    return %arg0, %c0_i32 : i32, i32
  }
  func.func @transform_1(%arg0: i32) -> (i32, i32) {
    %c0_i32 = arith.constant 0 : i32
    %c0_i32_0 = arith.constant 0 : i32
    return %arg0, %c0_i32 : i32, i32
  }
  func.func @transform_2(%arg0: i32) -> (i32, i32) {
    %c0_i32 = arith.constant 0 : i32
    %c0_i32_0 = arith.constant 0 : i32
    %c0_i32_1 = arith.constant 0 : i32
    return %c0_i32, %c0_i32_0 : i32, i32
  }
  func.func @transform_3(%arg0: i32) -> (i32, i32) {
    %c0_i32 = arith.constant 0 : i32
    %c0_i32_0 = arith.constant 0 : i32
    %c0_i32_1 = arith.constant 0 : i32
    return %c0_i32, %c0_i32_0 : i32, i32
  }
  func.func @transform_4(%arg0: i32) -> (i32, i32) {
    %c0_i32 = arith.constant 0 : i32
    %c0_i32_0 = arith.constant 0 : i32
    %c0_i32_1 = arith.constant 0 : i32
    return %c0_i32, %c0_i32_0 : i32, i32
  }
  func.func @transform_5(%arg0: i32) -> (i32, i32) {
    %c0_i32 = arith.constant 0 : i32
    %c0_i32_0 = arith.constant 0 : i32
    %c0_i32_1 = arith.constant 0 : i32
    return %c0_i32, %c0_i32_0 : i32, i32
  }
  func.func @transform_6(%arg0: i32) -> (i32, i32) {
    %c0_i32 = arith.constant 0 : i32
    %c0_i32_0 = arith.constant 0 : i32
    %c0_i32_1 = arith.constant 0 : i32
    return %c0_i32, %c0_i32_0 : i32, i32
  }
  func.func @transform_7(%arg0: i32) -> (i32, i32) {
    %c0_i32 = arith.constant 0 : i32
    %c0_i32_0 = arith.constant 0 : i32
    %c0_i32_1 = arith.constant 0 : i32
    return %c0_i32, %c0_i32_0 : i32, i32
  }
  func.func @transform_8(%arg0: i32) -> (i32, i32) {
    %c0_i32 = arith.constant 0 : i32
    %c0_i32_0 = arith.constant 0 : i32
    %c0_i32_1 = arith.constant 0 : i32
    return %c0_i32, %c0_i32_0 : i32, i32
  }
  func.func @transform_9(%arg0: i32) -> (i32, i32) {
    %c0_i32 = arith.constant 0 : i32
    %c0_i32_0 = arith.constant 0 : i32
    %c0_i32_1 = arith.constant 0 : i32
    return %c0_i32, %c0_i32_0 : i32, i32
  }
  func.func @transform_10(%arg0: i32) -> (i32, i32) {
    %c0_i32 = arith.constant 0 : i32
    %c0_i32_0 = arith.constant 0 : i32
    %c0_i32_1 = arith.constant 0 : i32
    return %c0_i32, %c0_i32_0 : i32, i32
  }
  func.func @transform_11(%arg0: i32) -> (i32, i32) {
    %c0_i32 = arith.constant 0 : i32
    %c0_i32_0 = arith.constant 0 : i32
    %c0_i32_1 = arith.constant 0 : i32
    return %c0_i32, %c0_i32_0 : i32, i32
  }
  func.func @transform_12(%arg0: i32) -> (i32, i32) {
    %c0_i32 = arith.constant 0 : i32
    %c0_i32_0 = arith.constant 0 : i32
    %c0_i32_1 = arith.constant 0 : i32
    return %c0_i32, %c0_i32_0 : i32, i32
  }
  func.func @transform_13(%arg0: i32) -> (i32, i32) {
    %c0_i32 = arith.constant 0 : i32
    %c0_i32_0 = arith.constant 0 : i32
    %c0_i32_1 = arith.constant 0 : i32
    return %c0_i32, %c0_i32_0 : i32, i32
  }
  func.func @transform_14(%arg0: i32) -> (i32, i32) {
    %c0_i32 = arith.constant 0 : i32
    %c0_i32_0 = arith.constant 0 : i32
    return %arg0, %c0_i32 : i32, i32
  }
}

</mosaic_0001>

<bundles_post_ra>
// kernel: tpu_custom_call.1
= control target key start
LH: loop header
LB: loop body
LE: loop exit
PB: predicated region body
PF: predicated region fallthrough
CT: control target
= control target key end

     0   :  { %19 = vsyncpa [#allocation3], 0  ;;  %s1352_s0 = inlined_call_operand.vmem [shape: f32[8,32], index: 0, kind: input, shape index: {}]   ;;  %s1353_s1 = inlined_call_operand.hbm [shape: f32[8,128], index: 1, kind: input, shape index: {}]   ;;  %s1354_s2 = inlined_call_operand.hbm [shape: f32[32,64], index: 2, kind: input, shape index: {}]   ;;  %s1355_s3 = inlined_call_operand.hbm [shape: f32[1,64], index: 3, kind: input, shape index: {}]   ;;  %s1356_s4 = inlined_call_operand.vmem [shape: f32[64,64], index: 4, kind: input, shape index: {}]   ;;  %s1357_s5 = inlined_call_operand.hbm [shape: f32[1,64], index: 5, kind: input, shape index: {}]   ;;  %s1358_s6 = inlined_call_operand.vmem [shape: f32[64,256], index: 6, kind: input, shape index: {}]   ;;  %s1359_s7 = inlined_call_operand.vmem [shape: f32[1,256], index: 7, kind: input, shape index: {}]   ;;  %s1360_s8 = inlined_call_operand.vmem [shape: f32[128,64], index: 8, kind: input, shape index: {}]   ;;  %s1361_s9 = inlined_call_operand.vmem [shape: f32[1,64], index: 9, kind: input, shape index: {}]   ;;  %s1362_s10 = inlined_call_operand.hbm [shape: f32[64,64], index: 10, kind: input, shape index: {}]   ;;  %s1363_s11 = inlined_call_operand.vmem [shape: f32[1,64], index: 11, kind: input, shape index: {}]   ;;  %s1364_s12 = inlined_call_operand.hbm [shape: f32[64,128], index: 12, kind: input, shape index: {}]   ;;  %s1365_s13 = inlined_call_operand.vmem [shape: f32[1,128], index: 13, kind: input, shape index: {}]   ;;  %s1366_s14 = inlined_call_operand.hbm [shape: f32[8,128], index: 14, kind: output, shape index: {}]  }
   0x1   :  { %20 = vsyncpa [#allocation6], 0 }
   0x2   :  { %21 = vsyncpa [#allocation9], 0 }
   0x3   :  { %22 = vsyncpa [#allocation12], 0 }
   0x4   :  { %23 = vsyncpa [#allocation4], 0  ;;  %s1042_s29 = smov [#allocation5]  }
   0x5   :  { %s41_s30 = sshll.u32 %s1042_s29, 4  ;;  %s42_s30 = int_to_ptr.vmem [resolvable:$true] %s41_s30 }
   0x6   :  { %s900_s15 = scalar_lea.vmem %s42_s30, 512  ;;  %p905_p1 = scmp.lt.s32.totalorder %s42_s30, %s42_s30 }
   0x7   :  { %p901_p0 = scmp.ne.s32.totalorder %s42_s30, %s900_s15  ;;  %p906_p2 = scmp.lt.s32.totalorder %s900_s15, %s900_s15 }
   0x9   :  { %p907_p3 = por %p906_p2, %p905_p1 }
   0xb   :  { %p908_p4 = pnand %p907_p3, %p901_p0 }
   0xd   :  { %911 = shalt.err (!%p908_p4)
}
   0xe   :  { %s1043_s16 = smov 128   ;;  %s1044_s17 = smov 8  }
   0xf   :  { %47 = dma.hbm_to_vmem [thread:$0]  %s1354_s2, 512, %s42_s30, [#allocation6], %s1043_s16, %s1043_s16, %s1044_s17  }
  0x10   :  { %s1045_s20 = smov [#allocation8]   ;;  %s1046_s22 = smov [#allocation2]  }
  0x11   :  { %s66_s21 = sshll.u32 %s1045_s20, 4  ;;  %s32_s23 = sshll.u32 %s1046_s22, 4  ;;  %s67_s21 = int_to_ptr.vmem [resolvable:$true] %s66_s21  ;;  %s33_s23 = int_to_ptr.vmem [resolvable:$true] %s32_s23 }
  0x12   :  { %s920_s24 = scalar_lea.vmem %s67_s21, 16  ;;  %s924_s25 = scalar_lea.vmem %s67_s21, 32 }
  0x13   :  { %p921_p5 = scmp.ne.s32.totalorder %s67_s21, %s920_s24  ;;  %p925_p6 = scmp.lt.s32.totalorder %s67_s21, %s67_s21 }
  0x14   :  { %p926_p7 = scmp.lt.s32.totalorder %s924_s25, %s920_s24 }
  0x16   :  { %p927_p8 = por %p926_p7, %p925_p6 }
  0x18   :  { %p928_p9 = pnand %p927_p8, %p921_p5 }
  0x1a   :  { %931 = shalt.err (!%p928_p9)
}
  0x1b   :  { %69 = dma.hbm_to_vmem [thread:$0]  %s1357_s5, 16, %s67_s21, [#allocation9]  }
  0x1c   :  { %s940_s28 = scalar_lea.vmem %s33_s23, 128  ;;  %p945_p11 = scmp.lt.s32.totalorder %s33_s23, %s33_s23 }
  0x1d   :  { %p941_p10 = scmp.ne.s32.totalorder %s33_s23, %s940_s28  ;;  %p946_p12 = scmp.lt.s32.totalorder %s940_s28, %s940_s28 }
  0x1f   :  { %p947_p13 = por %p946_p12, %p945_p11 }
  0x21   :  { %p948_p0 = pnand %p947_p13, %p941_p10 }
  0x23   :  { %951 = shalt.err (!%p948_p0)
}
  0x24   :  { %35 = dma.hbm_to_vmem [thread:$0]  %s1353_s1, 128, %s33_s23, [#allocation3]  }
  0x25   :  { %s1047_s30 = smov [#allocation7]   ;;  %s1048_s18 = smov [#allocation10]  }
  0x26   :  { %s54_s15 = sshll.u32 %s1047_s30, 4  ;;  %s83_s19 = sshll.u32 %s1048_s18, 4  ;;  %s55_s15 = int_to_ptr.vmem [resolvable:$true] %s54_s15  ;;  %s84_s19 = int_to_ptr.vmem [resolvable:$true] %s83_s19 }
  0x27   :  { %s960_s20 = scalar_lea.vmem %s55_s15, 16  ;;  %s964_s5 = scalar_lea.vmem %s55_s15, 32 }
  0x28   :  { %p961_p1 = scmp.ne.s32.totalorder %s55_s15, %s960_s20  ;;  %p965_p2 = scmp.lt.s32.totalorder %s55_s15, %s55_s15 }
  0x29   :  { %p966_p3 = scmp.lt.s32.totalorder %s964_s5, %s960_s20 }
  0x2b   :  { %p967_p4 = por %p966_p3, %p965_p2 }
  0x2d   :  { %p968_p5 = pnand %p967_p4, %p961_p1 }
  0x2f   :  { %971 = shalt.err (!%p968_p5)
}
  0x30   :  { %57 = dma.hbm_to_vmem [thread:$0]  %s1355_s3, 16, %s55_s15, [#allocation6]  }
  0x31   :  { %s980_s24 = scalar_lea.vmem %s84_s19, 1024  ;;  %p985_p7 = scmp.lt.s32.totalorder %s84_s19, %s84_s19 }
  0x32   :  { %p981_p6 = scmp.ne.s32.totalorder %s84_s19, %s980_s24  ;;  %p986_p8 = scmp.lt.s32.totalorder %s980_s24, %s980_s24 }
  0x34   :  { %p987_p9 = por %p986_p8, %p985_p7 }
  0x36   :  { %p988_p10 = pnand %p987_p9, %p981_p6 }
  0x38   :  { %991 = shalt.err (!%p988_p10)
}
  0x39   :  { %89 = dma.hbm_to_vmem [thread:$0]  %s1362_s10, 1024, %s84_s19, [#allocation9], %s1043_s16, %s1043_s16, %s1044_s17  }
  0x3a   :  { %s1049_s25 = smov [#allocation11]  }
  0x3b   :  { %s97_s26 = sshll.u32 %s1049_s25, 4  ;;  %s98_s26 = int_to_ptr.vmem [resolvable:$true] %s97_s26 }
  0x3c   :  { %s1000_s27 = scalar_lea.vmem %s98_s26, 1024  ;;  %p1005_p12 = scmp.lt.s32.totalorder %s98_s26, %s98_s26 }
  0x3d   :  { %p1001_p11 = scmp.ne.s32.totalorder %s98_s26, %s1000_s27  ;;  %p1006_p13 = scmp.lt.s32.totalorder %s1000_s27, %s1000_s27 }
  0x3f   :  { %p1007_p0 = por %p1006_p13, %p1005_p12 }
  0x41   :  { %p1008_p1 = pnand %p1007_p0, %p1001_p11 }
  0x43   :  { %1011 = shalt.err (!%p1008_p1)
}
  0x44   :  { %103 = dma.hbm_to_vmem [thread:$0]  %s1364_s12, 1024, %s98_s26, [#allocation12], %s1043_s16, %s1043_s16, %s1044_s17  }
  0x45   :  { %1032 = dma.done.wait [#allocation3], 128  }
  0x46   :  { %1033 = vsyncadd [#allocation3], 4294967168 }
  0x47   :  { %1034 = dma.done.wait [#allocation6], 528  }
  0x48   :  { %1035 = vsyncadd [#allocation6], 4294966768 }
  0x49   :  { %1036 = dma.done.wait [#allocation9], 1040  }
  0x4a   :  { %1037 = vsyncadd [#allocation9], 4294966256 }
  0x4b   :  { %1038 = dma.done.wait [#allocation12], 1024  }
  0x4c   :  { %1039 = vsyncadd [#allocation12], 4294966272  ;;  %v1050_v0 = vmov 0.0   ;;  %vm1051_vm0 = vmmov 0   ;;  %v128_v1 = vld [vmem:[#allocation5 + $0x18] sm:$0xff]  ;;  %v127_v2 = vld [vmem:[#allocation5 + $0x10] sm:$0xff]  ;;  %v319_v56 = vlaneseq }
  0x4d   :  { %764 = vmatprep.subr.mxu0 %v1050_v0  ;;  %772 = vmatprep.mubr.msk.f32.mxu0 %vm1051_vm0, %v1050_v0  ;;  %v126_v3 = vld [vmem:[#allocation5 + $0x8] sm:$0xff]  ;;  %v125_v4 = vld [vmem:[#allocation5] sm:$0xff]  ;;  %v124_v5 = vld [vmem:[%s1352_s0] sm:$0xff]  ;;  %vm136_vm1 = vcmask 261120   ;;  %vm226_vm2 = vcmask 523264  }
  0x4e   :  { %775 = vmatprep.subr.mxu1 %v1050_v0  ;;  %791 = vmatprep.mubr.msk.f32.mxu1 %vm1051_vm0, %v1050_v0  ;;  %v218_v6 = vld [vmem:[%s1356_s4 + $0x38] sm:$0xff]  ;;  %v217_v7 = vld [vmem:[%s1356_s4 + $0x30] sm:$0xff]  ;;  %v216_v8 = vld [vmem:[%s1356_s4 + $0x28] sm:$0xff]  ;;  %v320_v57 = vshrl.u32 %v319_v56, 7 }
  0x4f   :  { %765 = vmatpush3.msra.mxu0 %v128_v1  ;;  %776 = vmatpush3.msra.mxu1 %v218_v6  ;;  %v215_v9 = vld [vmem:[%s1356_s4 + $0x20] sm:$0xff]  ;;  %v214_v10 = vld [vmem:[%s1356_s4 + $0x18] sm:$0xff]  ;;  %v213_v11 = vld [vmem:[%s1356_s4 + $0x10] sm:$0xff] }
  0x50   :  { %766 = vmatprep.subr.mxu0 %v1050_v0  ;;  %777 = vmatprep.subr.mxu1 %v1050_v0  ;;  %v212_v12 = vld [vmem:[%s1356_s4 + $0x8] sm:$0xff]  ;;  %v211_v13 = vld [vmem:[%s1356_s4] sm:$0xff]  ;;  %v316_v19 = vld [vmem:[%s1358_s6 + $0x78] sm:$0xff]  ;;  %v325_v58 = vsub.s32 1, %v320_v57 }
  0x51   :  { %767 = vmatpush3.msra.mxu0 %v127_v2  ;;  %778 = vmatpush3.msra.mxu1 %v217_v7  ;;  %v704_v14 = vld [vmem:[#allocation7] ss:$0 sm:$0xff]  ;;  %v315_v20 = vld [vmem:[%s1358_s6 + $0x70] sm:$0xff]  ;;  %v313_v22 = vld [vmem:[%s1358_s6 + $0x60] sm:$0xff]  ;;  %v321_v2 = vsub.s32 0, %v320_v57 }
  0x52   :  { %768 = vmatprep.subr.mxu0 %v1050_v0  ;;  %779 = vmatprep.subr.mxu1 %v1050_v0  ;;  %v314_v21 = vld [vmem:[%s1358_s6 + $0x68] sm:$0xff]  ;;  %v312_v23 = vld [vmem:[%s1358_s6 + $0x58] sm:$0xff]  ;;  %v311_v24 = vld [vmem:[%s1358_s6 + $0x50] sm:$0xff] }
  0x53   :  { %769 = vmatpush3.msra.mxu0 %v126_v3  ;;  %780 = vmatpush3.msra.mxu1 %v216_v8  ;;  %v310_v25 = vld [vmem:[%s1358_s6 + $0x48] sm:$0xff]  ;;  %v309_v26 = vld [vmem:[%s1358_s6 + $0x40] sm:$0xff]  ;;  %v308_v27 = vld [vmem:[%s1358_s6 + $0x38] sm:$0xff] }
  0x54   :  { %770 = vmatprep.subr.mxu0 %v1050_v0  ;;  %781 = vmatprep.subr.mxu1 %v1050_v0  ;;  %v307_v28 = vld [vmem:[%s1358_s6 + $0x30] sm:$0xff]  ;;  %v306_v29 = vld [vmem:[%s1358_s6 + $0x28] sm:$0xff]  ;;  %v305_v30 = vld [vmem:[%s1358_s6 + $0x20] sm:$0xff] }
  0x55   :  { %771 = vmatpush3.msra.mxu0 %v125_v4  ;;  %782 = vmatpush3.msra.mxu1 %v215_v9  ;;  %v304_v31 = vld [vmem:[%s1358_s6 + $0x18] sm:$0xff]  ;;  %v303_v32 = vld [vmem:[%s1358_s6 + $0x10] sm:$0xff]  ;;  %v302_v33 = vld [vmem:[%s1358_s6 + $0x8] sm:$0xff] }
  0x56   :  { %773 = vmatmul.mubr.msk.f32.vlgmr.msra.gmra.mxu0 %vm136_vm1, %v124_v5  ;;  %783 = vmatprep.subr.mxu1 %v1050_v0  ;;  %v301_v34 = vld [vmem:[%s1358_s6] sm:$0xff]  ;;  %v423_v35 = vld [vmem:[%s1360_s8 + $0x78] sm:$0xff]  ;;  %v422_v36 = vld [vmem:[%s1360_s8 + $0x70] sm:$0xff] }
  0x57   :  { %396 = vmatprep.mubr.f32.mxu0 %v1050_v0  ;;  %784 = vmatpush3.msra.mxu1 %v214_v10  ;;  %v421_v37 = vld [vmem:[%s1360_s8 + $0x68] sm:$0xff]  ;;  %v420_v43 = vld [vmem:[%s1360_s8 + $0x60] sm:$0xff]  ;;  %v419_v44 = vld [vmem:[%s1360_s8 + $0x58] sm:$0xff] }
  0x58   :  { %785 = vmatprep.subr.mxu1 %v1050_v0  ;;  %348 = vmatprep.subr.mxu0 %v316_v19  ;;  %v706_v38 = vld [vmem:[#allocation8] ss:$0 sm:$0xff]  ;;  %v418_v45 = vld [vmem:[%s1360_s8 + $0x50] sm:$0xff]  ;;  %v416_v47 = vld [vmem:[%s1360_s8 + $0x40] sm:$0xff] }
  0x59   :  { %786 = vmatpush3.msra.mxu1 %v213_v11  ;;  %349 = vmatpush1.msra.mxu0 %v315_v20  ;;  %v417_v46 = vld [vmem:[%s1360_s8 + $0x48] sm:$0xff]  ;;  %v415_v48 = vld [vmem:[%s1360_s8 + $0x38] sm:$0xff]  ;;  %v414_v49 = vld [vmem:[%s1360_s8 + $0x30] sm:$0xff] }
  0x5a   :  { %787 = vmatprep.subr.mxu1 %v1050_v0  ;;  %350 = vmatprep.subr.mxu0 %v314_v21  ;;  %v413_v50 = vld [vmem:[%s1360_s8 + $0x28] sm:$0xff]  ;;  %v412_v51 = vld [vmem:[%s1360_s8 + $0x20] sm:$0xff]  ;;  %v411_v52 = vld [vmem:[%s1360_s8 + $0x18] sm:$0xff] }
  0x5b   :  { %788 = vmatpush3.msra.mxu1 %v212_v12  ;;  %351 = vmatpush1.msra.mxu0 %v313_v22  ;;  %v410_v53 = vld [vmem:[%s1360_s8 + $0x10] sm:$0xff]  ;;  %v409_v54 = vld [vmem:[%s1360_s8 + $0x8] sm:$0xff]  ;;  %v408_v55 = vld [vmem:[%s1360_s8] sm:$0xff] }
  0x5c   :  { %789 = vmatprep.subr.mxu1 %v1050_v0  ;;  %352 = vmatprep.subr.mxu0 %v312_v23  ;;  %v317_v59 = vld [vmem:[%s1359_s7] sm:$0x3]  ;;  %v509_v9 = vld [vmem:[#allocation10 + $0x38] sm:$0xff]  ;;  %v507_v11 = vld [vmem:[#allocation10 + $0x28] sm:$0xff] }
  0x5d   :  { %790 = vmatpush3.msra.mxu1 %v211_v13  ;;  %353 = vmatpush1.msra.mxu0 %v311_v24  ;;  %v326_v60 = vrot.slane %v317_v59, %v325_v58  ;;  %v322_v3 = vrot.slane %v317_v59, %v321_v2  ;;  %v403_v4 = vld [vmem:[#allocation2] sm:$0xff]  ;;  %v506_v12 = vld [vmem:[#allocation10 + $0x20] sm:$0xff]  ;;  %v596_v24 = vld [vmem:[#allocation11 + $0x28] sm:$0xff] }
  0x5e   :  { %794 = vmatprep.subr.mxu1 %v1050_v0  ;;  %354 = vmatprep.subr.mxu0 %v310_v25  ;;  %v508_v10 = vld [vmem:[#allocation10 + $0x30] sm:$0xff]  ;;  %v505_v13 = vld [vmem:[#allocation10 + $0x18] sm:$0xff]  ;;  %v595_v25 = vld [vmem:[#allocation11 + $0x20] sm:$0xff] }
  0x5f   :  { %355 = vmatpush1.msra.mxu0 %v309_v26  ;;  %v598_v22 = vld [vmem:[#allocation11 + $0x38] sm:$0xff]  ;;  %v597_v23 = vld [vmem:[#allocation11 + $0x30] sm:$0xff] }
  0x60   :  { %356 = vmatprep.subr.mxu0 %v308_v27  ;;  %v594_v26 = vld [vmem:[#allocation11 + $0x18] sm:$0xff]  ;;  %v593_v27 = vld [vmem:[#allocation11 + $0x10] sm:$0xff] }
  0x61   :  { %357 = vmatpush1.msra.mxu0 %v307_v28  ;;  %v592_v28 = vld [vmem:[#allocation11 + $0x8] sm:$0xff] }
  0x62   :  { %358 = vmatprep.subr.mxu0 %v306_v29  ;;  %v591_v29 = vld [vmem:[#allocation11] sm:$0xff] }
  0x63   :  { %359 = vmatpush1.msra.mxu0 %v305_v30  ;;  %v710_v30 = vld [vmem:[%s1363_s11] ss:$0 sm:$0xff]  ;;  %s1052_s11 = smov [#allocation13]  }
  0x64   :  { %360 = vmatprep.subr.mxu0 %v304_v31  ;;  %s692_s21 = sshll.u32 %s1052_s11, 4  ;;  %s693_s21 = int_to_ptr.vmem [resolvable:$true] %s692_s21 }
  0x65   :  { %361 = vmatpush1.msra.mxu0 %v303_v32  ;;  %s1012_s22 = scalar_lea.vmem %s693_s21, 128  ;;  %p1017_p3 = scmp.lt.s32.totalorder %s693_s21, %s693_s21 }
  0x66   :  { %362 = vmatprep.subr.mxu0 %v302_v33  ;;  %p1013_p2 = scmp.ne.s32.totalorder %s693_s21, %s1012_s22  ;;  %p1018_p4 = scmp.lt.s32.totalorder %s1012_s22, %s1012_s22 }
  0x67   :  { %363 = vmatpush1.msra.mxu0 %v301_v34 }
  0x68   :  { %829 = vmatprep.subr.mxu0 %v1050_v0  ;;  %p1019_p5 = por %p1018_p4, %p1017_p3 }
  0x6a   :  { %p1020_p6 = pnand %p1019_p5, %p1013_p2 }
 0x116   :  { %v206_v15 = vpop.f32.mrf.mxu0 }
 0x117   :  { %v207_v16 = vadd.f32 %v704_v14, %v206_v15  ;;  %v504_v14 = vld [vmem:[#allocation10 + $0x10] sm:$0xff]  ;;  %v503_v15 = vld [vmem:[#allocation10 + $0x8] sm:$0xff] }
 0x118   :  { %v774_v17 = vpop.f32.mrf.mxu0 }
 0x119   :  { %878 = vtanh.f32 %v207_v16  ;;  %v502_v16 = vld [vmem:[#allocation10] sm:$0xff]  ;;  %v709_v17 = vld [vmem:[%s1361_s9] ss:$0 sm:$0xff] }
 0x126   :  { %v879_v18 = vpop.eup %878 }
 0x127   :  { %792 = vmatmul.mubr.msk.f32.vlgmr.msra.gmra.mxu1 %vm226_vm2, %v879_v18 }
 0x128   :  { %826 = vmatprep.mubr.msk.f32.mxu1 %vm1051_vm0, %v1050_v0  ;;  %795 = vmatpush3.msra.mxu1 %v423_v35  ;;  %v712_v35 = vld [vmem:[%s1365_s13] ss:$0 sm:$0xff] }
 0x129   :  { %796 = vmatprep.subr.mxu1 %v1050_v0 }
 0x12a   :  { %797 = vmatpush3.msra.mxu1 %v422_v36 }
 0x12b   :  { %798 = vmatprep.subr.mxu1 %v1050_v0 }
 0x12c   :  { %799 = vmatpush3.msra.mxu1 %v421_v37 }
 0x12d   :  { %800 = vmatprep.subr.mxu1 %v1050_v0 }
 0x12e   :  { %801 = vmatpush3.msra.mxu1 %v420_v43 }
 0x12f   :  { %802 = vmatprep.subr.mxu1 %v1050_v0 }
 0x130   :  { %803 = vmatpush3.msra.mxu1 %v419_v44 }
 0x131   :  { %804 = vmatprep.subr.mxu1 %v1050_v0 }
 0x132   :  { %805 = vmatpush3.msra.mxu1 %v418_v45 }
 0x133   :  { %806 = vmatprep.subr.mxu1 %v1050_v0 }
 0x134   :  { %807 = vmatpush3.msra.mxu1 %v417_v46 }
 0x135   :  { %808 = vmatprep.subr.mxu1 %v1050_v0 }
 0x136   :  { %809 = vmatpush3.msra.mxu1 %v416_v47 }
 0x137   :  { %810 = vmatprep.subr.mxu1 %v1050_v0 }
 0x138   :  { %811 = vmatpush3.msra.mxu1 %v415_v48 }
 0x139   :  { %812 = vmatprep.subr.mxu1 %v1050_v0 }
 0x13a   :  { %813 = vmatpush3.msra.mxu1 %v414_v49 }
 0x13b   :  { %814 = vmatprep.subr.mxu1 %v1050_v0 }
 0x13c   :  { %815 = vmatpush3.msra.mxu1 %v413_v50 }
 0x13d   :  { %816 = vmatprep.subr.mxu1 %v1050_v0 }
 0x13e   :  { %817 = vmatpush3.msra.mxu1 %v412_v51 }
 0x13f   :  { %818 = vmatprep.subr.mxu1 %v1050_v0 }
 0x140   :  { %819 = vmatpush3.msra.mxu1 %v411_v52 }
 0x141   :  { %820 = vmatprep.subr.mxu1 %v1050_v0 }
 0x142   :  { %821 = vmatpush3.msra.mxu1 %v410_v53 }
 0x143   :  { %822 = vmatprep.subr.mxu1 %v1050_v0 }
 0x144   :  { %823 = vmatpush3.msra.mxu1 %v409_v54 }
 0x145   :  { %824 = vmatprep.subr.mxu1 %v1050_v0 }
 0x146   :  { %825 = vmatpush3.msra.mxu1 %v408_v55 }
 0x1e7   :  { %v296_v39 = vpop.f32.mrf.mxu1 }
 0x1e8   :  { %v297_v40 = vadd.f32 %v706_v38, %v296_v39 }
 0x1e9   :  { %v793_v41 = vpop.f32.mrf.mxu1 }
 0x1ea   :  { %880 = vtanh.f32 %v297_v40 }
 0x1f7   :  { %v881_v42 = vpop.eup %880 }
 0x1f8   :  { %708 = vmatmul.mubr.msk.f32.vlgmr.msra.gmra.mxu0 %vm226_vm2, %v881_v42 }
 0x1f9   :  { %845 = vmatprep.mubr.msk.f32.mxu0 %vm1051_vm0, %v1050_v0  ;;  %830 = vmatpush3.msra.mxu0 %v509_v9 }
 0x1fa   :  { %831 = vmatprep.subr.mxu0 %v1050_v0 }
 0x1fb   :  { %832 = vmatpush3.msra.mxu0 %v508_v10 }
 0x1fc   :  { %833 = vmatprep.subr.mxu0 %v1050_v0 }
 0x1fd   :  { %834 = vmatpush3.msra.mxu0 %v507_v11 }
 0x1fe   :  { %835 = vmatprep.subr.mxu0 %v1050_v0 }
 0x1ff   :  { %836 = vmatpush3.msra.mxu0 %v506_v12 }
 0x200   :  { %837 = vmatprep.subr.mxu0 %v1050_v0 }
 0x201   :  { %838 = vmatpush3.msra.mxu0 %v505_v13 }
 0x202   :  { %839 = vmatprep.subr.mxu0 %v1050_v0 }
 0x203   :  { %840 = vmatpush3.msra.mxu0 %v504_v14 }
 0x204   :  { %841 = vmatprep.subr.mxu0 %v1050_v0 }
 0x205   :  { %842 = vmatpush3.msra.mxu0 %v503_v15 }
 0x206   :  { %843 = vmatprep.subr.mxu0 %v1050_v0 }
 0x207   :  { %844 = vmatpush3.msra.mxu0 %v502_v16 }
 0x208   :  { %848 = vmatprep.subr.mxu0 %v1050_v0 }
 0x2b8   :  { %v398_v61 = vpop.f32.mrf.mxu0 }
 0x2b9   :  { %v399_v6 = vadd.f32 %v398_v61, %v322_v3 }
 0x2ba   :  { %v400_v62 = vpop.f32.mrf.mxu0 }
 0x2bb   :  { %v401_v63 = vadd.f32 %v400_v62, %v326_v60 }
 0x2bd   :  { %v404_v1 = vmul.f32 1.442695, %v401_v63 }
 0x2bf   :  { %882 = vpow2.f32 %v404_v1 }
 0x2cc   :  { %v883_v5 = vpop.eup %882 }
 0x2cd   :  { %v406_v7 = vmul.f32 %v883_v5, %v403_v4 }
 0x2cf   :  { %v407_v8 = vadd.f32 %v406_v7, %v399_v6 }
 0x2d1   :  { %827 = vmatmul.mubr.f32.vlgmr.msra.gmra.mxu1 %v407_v8 }
 0x391   :  { %v497_v18 = vpop.f32.mrf.mxu1 }
 0x392   :  { %v498_v19 = vadd.f32 %v709_v17, %v497_v18 }
 0x393   :  { %v828_v20 = vpop.f32.mrf.mxu1 }
 0x394   :  { %884 = vtanh.f32 %v498_v19 }
 0x3a1   :  { %v885_v21 = vpop.eup %884 }
 0x3a2   :  { %846 = vmatmul.mubr.msk.f32.vlgmr.msra.gmra.mxu0 %vm226_vm2, %v885_v21 }
 0x3a3   :  { %864 = vmatprep.mubr.msk.f32.mxu0 %vm1051_vm0, %v1050_v0  ;;  %849 = vmatpush3.msra.mxu0 %v598_v22 }
 0x3a4   :  { %850 = vmatprep.subr.mxu0 %v1050_v0 }
 0x3a5   :  { %851 = vmatpush3.msra.mxu0 %v597_v23 }
 0x3a6   :  { %852 = vmatprep.subr.mxu0 %v1050_v0 }
 0x3a7   :  { %853 = vmatpush3.msra.mxu0 %v596_v24 }
 0x3a8   :  { %854 = vmatprep.subr.mxu0 %v1050_v0 }
 0x3a9   :  { %855 = vmatpush3.msra.mxu0 %v595_v25 }
 0x3aa   :  { %856 = vmatprep.subr.mxu0 %v1050_v0 }
 0x3ab   :  { %857 = vmatpush3.msra.mxu0 %v594_v26 }
 0x3ac   :  { %858 = vmatprep.subr.mxu0 %v1050_v0 }
 0x3ad   :  { %859 = vmatpush3.msra.mxu0 %v593_v27 }
 0x3ae   :  { %860 = vmatprep.subr.mxu0 %v1050_v0 }
 0x3af   :  { %861 = vmatpush3.msra.mxu0 %v592_v28 }
 0x3b0   :  { %862 = vmatprep.subr.mxu0 %v1050_v0 }
 0x3b1   :  { %863 = vmatpush3.msra.mxu0 %v591_v29 }
 0x462   :  { %v586_v31 = vpop.f32.mrf.mxu0 }
 0x463   :  { %v587_v32 = vadd.f32 %v710_v30, %v586_v31 }
 0x464   :  { %v847_v33 = vpop.f32.mrf.mxu0 }
 0x465   :  { %886 = vtanh.f32 %v587_v32 }
 0x472   :  { %v887_v34 = vpop.eup %886 }
 0x473   :  { %865 = vmatmul.mubr.msk.f32.vlgmr.msra.gmra.mxu0 %vm226_vm2, %v887_v34 }
 0x533   :  { %v675_v36 = vpop.f32.mrf.mxu0 }
 0x534   :  { %v676_v37 = vadd.f32 %v712_v35, %v675_v36 }
 0x535   :  { %v866_v38 = vpop.f32.mrf.mxu0 }
 0x536   :  { %v714_v0 = vmul.f32 -1.442695, %v676_v37 }
 0x538   :  { %888 = vpow2.f32 %v714_v0 }
 0x545   :  { %v889_v39 = vpop.eup %888 }
 0x546   :  { %v682_v40 = vadd.f32 1.0, %v889_v39 }
 0x548   :  { %890 = vrcp.f32 %v682_v40 }
 0x555   :  { %v891_v41 = vpop.eup %890 }
 0x556   :  { %685 = vst [vmem:[#allocation13] sm:$0xff] %v891_v41 }
 0x557   :  { %1023 = shalt.err (!%p1020_p6)
}
 0x558   :  { %695 = dma.vmem_to_hbm [thread:$0]  %s693_s21, 128, %s1366_s14, [#allocation4]  }
 0x559   :  { %1040 = dma.done.wait [#allocation4], 128  }
 0x55a   :  { %1041 = vsyncadd [#allocation4], 4294967168 }
 0x55b   :  { %699 = vsyncpa [#allocation3], 1 }
 0x55c   :  { %700 = vsyncpa [#allocation6], 1 }
 0x55d   :  { %701 = vsyncpa [#allocation9], 1 }
 0x55e   :  { %702 = vsyncpa [#allocation12], 1 }
 0x55f   :  { %703 = vsyncpa [#allocation4], 1 }

</bundles_post_ra>
